<compile_context>
chip_gen: v6e
topology: v6e:2x2x1
jax: 0.10.0
libtpu: 0.0.40
codegen_flags: <defaults>
</compile_context>

<pallas_src>
import jax
import jax.numpy as jnp
from jax import lax
from jax.experimental import pallas as pl
from jax.experimental.pallas import tpu as pltpu


def _round_up(x, m):
    return ((x + m - 1) // m) * m


def _masked_nll_partial_kernel(pred_ref, tgt_ref, mask_ref, w_ref,
                               num_ref, den_ref):
    # pred arrives in its native dtype; accumulate in f32.
    pred = pred_ref[...].astype(jnp.float32)      # (TN, Cp)
    tgt = tgt_ref[...]                            # (TN, 1) int32
    mask = mask_ref[...]                          # (TN, 1) f32
    w = w_ref[...]                                # (1, Cp) f32

    tn, cp = pred.shape
    col = lax.broadcasted_iota(jnp.int32, (tn, cp), 1)
    match = col == tgt                            # (TN, Cp) row-broadcast compare

    # where-select instead of float one-hot multiply: avoids -inf*0 NaNs for
    # non-target log-probs and drops the int->f32 cast + one VPU mul per element.
    w_b = jnp.broadcast_to(w, (tn, cp))
    sel_w = jnp.where(match, w_b, 0.0)            # weight[t_i], scattered over lanes
    sel_pw = jnp.where(match, pred * w_b, 0.0)    # weight[t_i] * pred[i, t_i]

    w_t = jnp.sum(sel_w, axis=-1, keepdims=True)      # (TN, 1)
    pw_t = jnp.sum(sel_pw, axis=-1, keepdims=True)    # (TN, 1)

    # Per-block partial sums (no carried state -> grid axis stays 'parallel'
    # and both TensorCores can work on independent row tiles on v7x).
    num_ref[...] = (-jnp.sum(pw_t * mask, keepdims=True)).reshape(1, 1, 1)
    den_ref[...] = jnp.sum(w_t * mask, keepdims=True).reshape(1, 1, 1)


def masked_nll_loss(pred, target, mask, weight=None, *,
                    tile_n=None, vmem_limit_bytes=48 * 1024 * 1024):
    """pred: (N, C) log-probs (any float dtype, kept native for the DMA);
    target: (N,) int class ids; mask: anything with N elements (e.g. (B, S));
    weight: optional (C,) class weights."""
    N, C = pred.shape

    # Lane-dense classes: pad small C up to 128 lanes so the VPU compare and
    # XLU lane reductions use full vregs. Zero padding is inert (padded classes
    # never match a valid target). Large C keeps a full-extent last-dim block.
    if C % 128 == 0 or C >= 128:
        c_pad = C
    else:
        c_pad = 128

    itemsize = jnp.dtype(pred.dtype).itemsize
    if tile_n is None:
        # Size the row tile from VMEM: pred block plus the lane-padded (TN,1)
        # target/mask blocks, double buffered, must stay well inside the scoped
        # VMEM limit on every generation (v7x has only 64 MiB VMEM per TC).
        per_row_bytes = c_pad * itemsize + 2 * 128 * 4
        tile_n = (8 * 1024 * 1024) // per_row_bytes
        tile_n = max(8, min(1024, (tile_n // 8) * 8))
    tile_n = min(tile_n, _round_up(N, 8))
    tile_n = max(8, (tile_n // 8) * 8)

    n_pad = _round_up(N, tile_n)
    grid_n = n_pad // tile_n

    # Pad rows with mask=0 (contributes 0 to both numerator and denominator)
    # and classes with 0 — no in-kernel tail handling needed.
    pred_p = jnp.pad(pred, ((0, n_pad - N), (0, c_pad - C)))
    tgt_p = jnp.pad(target.reshape(N, 1).astype(jnp.int32),
                    ((0, n_pad - N), (0, 0)))
    mask_p = jnp.pad(mask.reshape(N, 1).astype(jnp.float32),
                     ((0, n_pad - N), (0, 0)))
    if weight is None:
        w = jnp.ones((1, c_pad), jnp.float32)
    else:
        w = jnp.zeros((1, c_pad), jnp.float32).at[0, :C].set(
            jnp.asarray(weight, jnp.float32).reshape(C))

    num_part, den_part = pl.pallas_call(
        _masked_nll_partial_kernel,
        out_shape=(jax.ShapeDtypeStruct((grid_n, 1, 1), jnp.float32),
                   jax.ShapeDtypeStruct((grid_n, 1, 1), jnp.float32)),
        grid_spec=pltpu.PrefetchScalarGridSpec(
            num_scalar_prefetch=0,
            grid=(grid_n,),
            in_specs=[
                pl.BlockSpec((tile_n, c_pad), lambda i: (i, 0)),   # pred (native dtype)
                pl.BlockSpec((tile_n, 1), lambda i: (i, 0)),       # target
                pl.BlockSpec((tile_n, 1), lambda i: (i, 0)),       # mask
                pl.BlockSpec((1, c_pad), lambda i: (0, 0)),        # class weight (resident)
            ],
            out_specs=[
                pl.BlockSpec((1, 1, 1), lambda i: (i, 0, 0)),      # partial num
                pl.BlockSpec((1, 1, 1), lambda i: (i, 0, 0)),      # partial den
            ],
        ),
        compiler_params=pltpu.CompilerParams(
            dimension_semantics=("parallel",),
            vmem_limit_bytes=vmem_limit_bytes),
    )(pred_p, tgt_p, mask_p, w)

    num = jnp.sum(num_part)
    den = jnp.sum(den_part)
    return num / den


def _reference_loss(pred, target, mask, weight=None):
    N, C = pred.shape
    mask_ = mask.reshape(N, 1).astype(jnp.float32)
    picked = jnp.take_along_axis(pred * mask_, target.reshape(N, 1), axis=1)[:, 0]
    if weight is None:
        num = jnp.sum(-picked)
        den = jnp.sum(mask)
    else:
        w_t = weight[target]
        num = jnp.sum(-w_t * picked)
        den = jnp.sum(w_t * mask_[:, 0])
    return num / den


if __name__ == "__main__":
    key = jax.random.PRNGKey(0)
    batch, seq_len, n_classes = 2, 8, 4
    N = batch * seq_len

    k1, k2, k3, k4 = jax.random.split(key, 4)
    # pred: log-softmax outputs (N, C), as Model.forward would produce
    logits = jax.random.normal(k1, (N, n_classes), jnp.float32)
    pred = jax.nn.log_softmax(logits, axis=-1)
    target = jax.random.randint(k2, (N,), 0, n_classes, jnp.int32)
    mask = (jax.random.uniform(k3, (batch, seq_len)) > 0.3).astype(jnp.float32)
    class_weight = jax.random.uniform(k4, (n_classes,), jnp.float32) + 0.5

    # weight=None, f32 log-probs
    loss_none = masked_nll_loss(pred, target, mask, weight=None)
    jax.block_until_ready(loss_none)
    ref_none = _reference_loss(pred, target, mask, weight=None)
    assert jnp.allclose(loss_none, ref_none, rtol=1e-5, atol=1e-5), (loss_none, ref_none)

    # weighted, f32 log-probs
    loss_w = masked_nll_loss(pred, target, mask, weight=class_weight)
    jax.block_until_ready(loss_w)
    ref_w = _reference_loss(pred, target, mask, weight=class_weight)
    assert jnp.allclose(loss_w, ref_w, rtol=1e-5, atol=1e-5), (loss_w, ref_w)

    # bf16 log-probs streamed in native dtype (f32 accumulation in-kernel)
    pred_bf16 = pred.astype(jnp.bfloat16)
    loss_bf16 = masked_nll_loss(pred_bf16, target, mask, weight=class_weight)
    jax.block_until_ready(loss_bf16)
    ref_bf16 = _reference_loss(pred_bf16.astype(jnp.float32), target, mask,
                               weight=class_weight)
    assert jnp.allclose(loss_bf16, ref_bf16, rtol=1e-4, atol=1e-4), (loss_bf16, ref_bf16)

    print("KERNEL_OK")
</pallas_src>

<mosaic_0001>
module attributes {stable_mosaic.version = 11 : i64} {
  func.func @_masked_nll_partial_kernel(%arg0: i32, %arg1: memref<16x128xf32, #tpu.memory_space<vmem>>, %arg2: memref<16x1xi32, #tpu.memory_space<vmem>>, %arg3: memref<16x1xf32, #tpu.memory_space<vmem>>, %arg4: memref<1x128xf32, #tpu.memory_space<vmem>>, %arg5: memref<1x1x1xf32, #tpu.memory_space<vmem>>, %arg6: memref<1x1x1xf32, #tpu.memory_space<vmem>>) attributes {dimension_semantics = [#tpu.dimension_semantics<parallel>], iteration_bounds = array<i64: 1>, scalar_prefetch = 0 : i64, scratch_operands = 0 : i64, tpu.core_type = #tpu.core_type<tc>, window_params = [{transform_indices = @transform_0, window_bounds = array<i64: 16, 128>}, {transform_indices = @transform_1, window_bounds = array<i64: 16, 1>}, {transform_indices = @transform_2, window_bounds = array<i64: 16, 1>}, {pipeline_mode = #tpu.pipeline_mode<synchronous>, transform_indices = @transform_3, window_bounds = array<i64: 1, 128>}, {transform_indices = @transform_4, window_bounds = array<i64: 1, 1, 1>}, {transform_indices = @transform_5, window_bounds = array<i64: 1, 1, 1>}]} {
    %c0 = arith.constant 0 : index
    %c0_0 = arith.constant 0 : index
    %0 = vector.load %arg1[%c0, %c0_0] : memref<16x128xf32, #tpu.memory_space<vmem>>, vector<16x128xf32>
    %c0_1 = arith.constant 0 : index
    %c0_2 = arith.constant 0 : index
    %1 = vector.load %arg2[%c0_1, %c0_2] : memref<16x1xi32, #tpu.memory_space<vmem>>, vector<16x1xi32>
    %c0_3 = arith.constant 0 : index
    %c0_4 = arith.constant 0 : index
    %2 = vector.load %arg3[%c0_3, %c0_4] : memref<16x1xf32, #tpu.memory_space<vmem>>, vector<16x1xf32>
    %c0_5 = arith.constant 0 : index
    %c0_6 = arith.constant 0 : index
    %3 = vector.load %arg4[%c0_5, %c0_6] : memref<1x128xf32, #tpu.memory_space<vmem>>, vector<1x128xf32>
    %4 = tpu.iota {dimensions = array<i32: 1>} : vector<16x128xi32>
    %5 = vector.broadcast %1 : vector<16x1xi32> to vector<16x128xi32>
    %6 = arith.cmpi eq, %4, %5 : vector<16x128xi32>
    %7 = vector.shape_cast %3 : vector<1x128xf32> to vector<1x128xf32>
    %8 = vector.broadcast %7 : vector<1x128xf32> to vector<16x128xf32>
    %cst = arith.constant 0.000000e+00 : f32
    %9 = vector.broadcast %cst : f32 to vector<16x128xf32>
    %10 = arith.select %6, %8, %9 : vector<16x128xi1>, vector<16x128xf32>
    %11 = arith.mulf %0, %8 : vector<16x128xf32>
    %cst_7 = arith.constant 0.000000e+00 : f32
    %12 = vector.broadcast %cst_7 : f32 to vector<16x128xf32>
    %13 = arith.select %6, %11, %12 : vector<16x128xi1>, vector<16x128xf32>
    %cst_8 = arith.constant dense<0.000000e+00> : vector<16xf32>
    %14 = vector.multi_reduction <add>, %10, %cst_8 [1] : vector<16x128xf32> to vector<16xf32>
    %15 = vector.shape_cast %14 : vector<16xf32> to vector<16x1xf32>
    %cst_9 = arith.constant dense<0.000000e+00> : vector<16xf32>
    %16 = vector.multi_reduction <add>, %13, %cst_9 [1] : vector<16x128xf32> to vector<16xf32>
    %17 = vector.shape_cast %16 : vector<16xf32> to vector<16x1xf32>
    %18 = arith.mulf %17, %2 : vector<16x1xf32>
    %19 = vector.shape_cast %18 : vector<16x1xf32> to vector<1x16x1xf32>
    %cst_10 = arith.constant dense<0.000000e+00> : vector<1xf32>
    %20 = vector.multi_reduction <add>, %19, %cst_10 [1, 2] : vector<1x16x1xf32> to vector<1xf32>
    %21 = vector.shape_cast %20 : vector<1xf32> to vector<1x1x1xf32>
    %22 = vector.extract %21[0, 0, 0] : f32 from vector<1x1x1xf32>
    %23 = vector.broadcast %22 : f32 to vector<1x1xf32>
    %cst_11 = arith.constant 0.000000e+00 : f32
    %24 = vector.broadcast %cst_11 : f32 to vector<1x1xf32>
    %25 = arith.subf %24, %23 : vector<1x1xf32>
    %26 = vector.shape_cast %25 : vector<1x1xf32> to vector<1x1x1xf32>
    %c0_12 = arith.constant 0 : index
    %c0_13 = arith.constant 0 : index
    %c0_14 = arith.constant 0 : index
    %27 = vector.load %arg5[%c0_12, %c0_13, %c0_14] : memref<1x1x1xf32, #tpu.memory_space<vmem>>, vector<1x1x1xf32>
    tpu.vector_store %arg5[%c0_12, %c0_13, %c0_14], %26 {strides = array<i32>} : memref<1x1x1xf32, #tpu.memory_space<vmem>>, vector<1x1x1xf32>,
    %28 = arith.mulf %15, %2 : vector<16x1xf32>
    %29 = vector.shape_cast %28 : vector<16x1xf32> to vector<1x16x1xf32>
    %cst_15 = arith.constant dense<0.000000e+00> : vector<1xf32>
    %30 = vector.multi_reduction <add>, %29, %cst_15 [1, 2] : vector<1x16x1xf32> to vector<1xf32>
    %31 = vector.shape_cast %30 : vector<1xf32> to vector<1x1x1xf32>
    %32 = vector.extract %31[0, 0, 0] : f32 from vector<1x1x1xf32>
    %33 = vector.broadcast %32 : f32 to vector<1x1xf32>
    %34 = vector.shape_cast %33 : vector<1x1xf32> to vector<1x1x1xf32>
    %c0_16 = arith.constant 0 : index
    %c0_17 = arith.constant 0 : index
    %c0_18 = arith.constant 0 : index
    %35 = vector.load %arg6[%c0_16, %c0_17, %c0_18] : memref<1x1x1xf32, #tpu.memory_space<vmem>>, vector<1x1x1xf32>
    tpu.vector_store %arg6[%c0_16, %c0_17, %c0_18], %34 {strides = array<i32>} : memref<1x1x1xf32, #tpu.memory_space<vmem>>, vector<1x1x1xf32>,
    return
  }
  func.func @transform_0(%arg0: i32) -> (i32, i32) {
    %c0_i32 = arith.constant 0 : i32
    %c0_i32_0 = arith.constant 0 : i32
    return %arg0, %c0_i32 : i32, i32
  }
  func.func @transform_1(%arg0: i32) -> (i32, i32) {
    %c0_i32 = arith.constant 0 : i32
    %c0_i32_0 = arith.constant 0 : i32
    return %arg0, %c0_i32 : i32, i32
  }
  func.func @transform_2(%arg0: i32) -> (i32, i32) {
    %c0_i32 = arith.constant 0 : i32
    %c0_i32_0 = arith.constant 0 : i32
    return %arg0, %c0_i32 : i32, i32
  }
  func.func @transform_3(%arg0: i32) -> (i32, i32) {
    %c0_i32 = arith.constant 0 : i32
    %c0_i32_0 = arith.constant 0 : i32
    %c0_i32_1 = arith.constant 0 : i32
    return %c0_i32, %c0_i32_0 : i32, i32
  }
  func.func @transform_4(%arg0: i32) -> (i32, i32, i32) {
    %c0_i32 = arith.constant 0 : i32
    %c0_i32_0 = arith.constant 0 : i32
    %c0_i32_1 = arith.constant 0 : i32
    return %arg0, %c0_i32, %c0_i32_0 : i32, i32, i32
  }
  func.func @transform_5(%arg0: i32) -> (i32, i32, i32) {
    %c0_i32 = arith.constant 0 : i32
    %c0_i32_0 = arith.constant 0 : i32
    %c0_i32_1 = arith.constant 0 : i32
    return %arg0, %c0_i32, %c0_i32_0 : i32, i32, i32
  }
}

</mosaic_0001>

<bundles_post_ra>
// kernel: tpu_custom_call.1
= control target key start
LH: loop header
LB: loop body
LE: loop exit
PB: predicated region body
PF: predicated region fallthrough
CT: control target
= control target key end

     0   :  { %11 = vsyncpa [#allocation3], 0  ;;  %v174_v1 = vmov 0   ;;  %s236_s0 = inlined_call_operand.vmem [shape: f32[16,128], index: 0, kind: input, shape index: {}]   ;;  %s237_s1 = inlined_call_operand.vmem [shape: s32[16,1], index: 1, kind: input, shape index: {}]   ;;  %s238_s2 = inlined_call_operand.vmem [shape: f32[16,1], index: 2, kind: input, shape index: {}]   ;;  %s239_s3 = inlined_call_operand.vmem [shape: f32[1,128], index: 3, kind: input, shape index: {}]   ;;  %s240_s4 = inlined_call_operand.hbm [shape: f32[1,1,1], index: 4, kind: output, shape index: {0}]   ;;  %s241_s5 = inlined_call_operand.hbm [shape: f32[1,1,1], index: 5, kind: output, shape index: {1}]  }
   0x1   :  { %v23_v0 = vld [vmem:[%s237_s1] sm:$0xff]  ;;  %129 = vset.pattern.permute.xlu0 %v174_v1 }
   0x2   :  { %12 = vsyncpa [#allocation5], 0  ;;  %31 = vperm.xlu0 %129, %v23_v0   ;;  %v24_v2 = vld [vmem:[%s237_s1 + $0x8] sm:$0xff]  ;;  %v28_v3 = vlaneseq  ;;  %v121_v4 = vld [vmem:[%s239_s3] ss:$0 sm:$0xff]  ;;  %vm60_vm2 = vcmask 7168  }
   0x3   :  { %v21_v5 = vld [vmem:[%s236_s0] sm:$0xff]  ;;  %v22_v8 = vld [vmem:[%s236_s0 + $0x8] sm:$0xff]  ;;  %vm75_vm3 = vcmask 0   ;;  %s176_s6 = smov [#allocation4]  }
   0x4   :  { %v29_v6 = vand.u32 127, %v28_v3  ;;  %v46_v7 = vmul.f32 %v121_v4, %v21_v5  ;;  %v47_v12 = vmul.f32 %v121_v4, %v22_v8  ;;  %v25_v16 = vld [vmem:[%s238_s2] sm:$0xff]  ;;  %v26_v18 = vld [vmem:[%s238_s2 + $0x8] sm:$0xff]  ;;  %s175_s2 = smov [#allocation2]   ;;  %s109_s7 = sshll.u32 %s176_s6, 4  ;;  %s110_s7 = int_to_ptr.vmem [resolvable:$true] %s109_s7 }
   0x5   :  { %s99_s29 = sshll.u32 %s175_s2, 4  ;;  %s100_s29 = int_to_ptr.vmem [resolvable:$true] %s99_s29 }
   0x6   :  { %34 = vperm.xlu0 %129, %v24_v2   ;;  %s130_s9 = scalar_lea.vmem %s100_s29, 16  ;;  %s134_s10 = scalar_lea.vmem %s100_s29, 32 }
   0x7   :  { %p131_p0 = scmp.ne.s32.totalorder %s100_s29, %s130_s9  ;;  %p135_p1 = scmp.lt.s32.totalorder %s100_s29, %s100_s29 }
   0x8   :  { %p136_p2 = scmp.lt.s32.totalorder %s134_s10, %s130_s9 }
   0xa   :  { %p137_p3 = por %p136_p2, %p135_p1 }
   0xc   :  { %p138_p4 = pnand %p137_p3, %p131_p0 }
  0x7d   :  { %v32_v9 = vpop.permute.xlu0 %31 }
  0x7e   :  { %vm36_vm0 = vcmp.eq.s32.totalorder %v29_v6, %v32_v9 }
  0x7f   :  { %v44_v10 = vsel %vm36_vm0, %v121_v4, 0.0  ;;  %v48_v11 = vsel %vm36_vm0, %v46_v7, 0.0 }
  0x80   :  { %50 = vadd.xlane.f32.xlu0 %v44_v10  ;;  %54 = vadd.xlane.f32.xlu1 %v48_v11 }
  0x81   :  { %v35_v13 = vpop.permute.xlu0 %34 }
  0x82   :  { %vm37_vm1 = vcmp.eq.s32.totalorder %v29_v6, %v35_v13 }
  0x83   :  { %v49_v14 = vsel %vm37_vm1, %v47_v12, 0.0  ;;  %v45_v15 = vsel %vm37_vm1, %v121_v4, 0.0 }
  0x84   :  { %56 = vadd.xlane.f32.xlu1 %v49_v14 }
  0x88   :  { %52 = vadd.xlane.f32.xlu1 %v45_v15 }
 0x109   :  { %v55_v17 = vpop.xlane.xlu1 %54  ;;  %v51_v20 = vpop.xlane.xlu0 %50 }
 0x10a   :  { %v58_v19 = vmul.f32 %v55_v17, %v25_v16  ;;  %v77_v23 = vmul.f32 %v51_v20, %v25_v16 }
 0x10c   :  { %v61_v24 = vsel %vm60_vm2, %v58_v19, 0.0  ;;  %v79_v29 = vsel %vm60_vm2, %v77_v23, 0.0 }
 0x10d   :  { %v57_v21 = vpop.xlane.xlu1 %56 }
 0x10e   :  { %v59_v22 = vmul.f32 %v57_v21, %v26_v18 }
 0x110   :  { %v62_v25 = vsel %vm60_vm2, %v59_v22, 0.0 }
 0x111   :  { %v53_v26 = vpop.xlane.xlu1 %52  ;;  %v63_v27 = vadd.f32 %v62_v25, %v61_v24 }
 0x112   :  { %v78_v28 = vmul.f32 %v53_v26, %v26_v18 }
 0x113   :  { %64 = vadd.xlane.f32.xlu1 %v63_v27 }
 0x114   :  { %v80_v30 = vsel %vm60_vm2, %v78_v28, 0.0 }
 0x115   :  { %v81_v31 = vadd.f32 %v80_v30, %v79_v29 }
 0x117   :  { %82 = vadd.xlane.f32.xlu1 %v81_v31 }
 0x19c   :  { %v65_v32 = vpop.xlane.xlu1 %64 }
 0x19d   :  { %v66_v33 = vrot.slane %v65_v32, 4 }
 0x19f   :  { %v67_v34 = vadd.f32 %v66_v33, %v65_v32 }
 0x1a0   :  { %v83_v35 = vpop.xlane.xlu1 %82 }
 0x1a1   :  { %v68_v36 = vrot.slane %v67_v34, 2  ;;  %v84_v37 = vrot.slane %v83_v35, 4 }
 0x1a3   :  { %v85_v38 = vadd.f32 %v84_v37, %v83_v35  ;;  %v69_v39 = vadd.f32 %v68_v36, %v67_v34 }
 0x1a5   :  { %v86_v40 = vrot.slane %v85_v38, 2  ;;  %v70_v41 = vrot.slane %v69_v39, 1 }
 0x1a7   :  { %v87_v42 = vadd.f32 %v86_v40, %v85_v38  ;;  %v71_v43 = vadd.f32 %v70_v41, %v69_v39 }
 0x1a9   :  { %122 = vpush %v71_v43  ;;  %v88_v44 = vrot.slane %v87_v42, 1 }
 0x1ab   :  { %v89_v45 = vadd.f32 %v88_v44, %v87_v42 }
 0x1ad   :  { %124 = vpush %v89_v45 }
 0x1da   :  { %s123_s30 = spop %122 }
 0x1db   :  { %v73_v46 = vstv %s123_s30 }
 0x1dc   :  { %v74_v47 = vsub.f32 0.0, %v73_v46 }
 0x1de   :  { %s125_s8 = spop %124  ;;  %76 = vst.msk [vmem:[#allocation2] sm:$0x1] %vm75_vm3, %v74_v47 }
 0x1df   :  { %v91_v48 = vstv %s125_s8 }
 0x1e0   :  { %141 = shalt.err (!%p138_p4)
}
 0x1e1   :  { %102 = dma.vmem_to_hbm [thread:$0]  %s100_s29, 16, %s240_s4, [#allocation3]   ;;  %92 = vst.msk [vmem:[#allocation4] sm:$0x1] %vm75_vm3, %v91_v48 }
 0x1e2   :  { %s150_s13 = scalar_lea.vmem %s110_s7, 16  ;;  %s154_s14 = scalar_lea.vmem %s110_s7, 32 }
 0x1e3   :  { %p151_p5 = scmp.ne.s32.totalorder %s110_s7, %s150_s13  ;;  %p155_p6 = scmp.lt.s32.totalorder %s110_s7, %s110_s7 }
 0x1e4   :  { %p156_p7 = scmp.lt.s32.totalorder %s154_s14, %s150_s13 }
 0x1e6   :  { %p157_p8 = por %p156_p7, %p155_p6 }
 0x1e8   :  { %p158_p9 = pnand %p157_p8, %p151_p5 }
 0x1ea   :  { %161 = shalt.err (!%p158_p9)
}
 0x1eb   :  { %112 = dma.vmem_to_hbm [thread:$0]  %s110_s7, 16, %s241_s5, [#allocation5]  }
 0x1ec   :  { %170 = dma.done.wait [#allocation3], 16  }
 0x1ed   :  { %171 = vsyncadd [#allocation3], 4294967280 }
 0x1ee   :  { %172 = dma.done.wait [#allocation5], 16  }
 0x1ef   :  { %173 = vsyncadd [#allocation5], 4294967280 }
 0x1f0   :  { %119 = vsyncpa [#allocation3], 1 }
 0x1f1   :  { %120 = vsyncpa [#allocation5], 1 }

</bundles_post_ra>
